<compile_context>
chip_gen: v5e
topology: v5e:2x2
jax: 0.10.0
libtpu: 0.0.40
codegen_flags: <defaults>
</compile_context>

<pallas_src>
import functools

import jax
import jax.numpy as jnp
import numpy as np
from jax import lax
from jax.experimental import pallas as pl
from jax.experimental.pallas import tpu as pltpu

BATCH_SIZE = 2   # B of the original module
FEATURES = 4     # F (columns 1 and 2 get the wrap/penalty treatment)

_LANES = 128
_NUM_CORES = 2            # engages both TCs on v7x; harmless on v5e/v6e
_PALLAS_MIN_BATCH = 1 << 18   # below this, fused XLA beats custom-call overhead


def _round_up(x, m):
    return (x + m - 1) // m * m


def _bcmse_kernel(o_ref, t_ref, out_ref, *, tile_r, feats, total,
                  inv_b, inv_bf, num_cores):
    """One (tile_r, 128) tile of the flattened [B*F] element stream.

    out_ref is this core's resident (8, 128) partial-sum accumulator
    (output block index depends only on the parallel core axis).
    """
    c = pl.program_id(0)          # core slot (outer, "parallel")
    i = pl.program_id(1)          # tile within this core (inner, "arbitrary")

    o = o_ref[...]                # (tile_r, 128) float32
    t = t_ref[...]

    # Logical (unclamped) block index. The index_map clamps the DMA source so
    # overflow grid steps re-read a valid block; `valid` zeroes them out here.
    blk = i * num_cores + c
    row = lax.broadcasted_iota(jnp.int32, (tile_r, _LANES), 0)
    lane = lax.broadcasted_iota(jnp.int32, (tile_r, _LANES), 1)
    gidx = (blk * tile_r + row) * _LANES + lane    # global flat element index
    valid = gidx < total                           # masks pad/overhang/dup tiles

    # Feature column from the lane index (feats divides 128, so the row offset
    # contributes 0 mod feats).
    feat = lane % feats
    wrapped_col = (feat == 1) | (feat == 2)

    flo = jnp.floor(o)
    # penalty |floor(x)| computed on the original outputs (pre-mutation).
    penalty = jnp.where(wrapped_col, jnp.abs(flo), 0.0)
    # outputs <- remainder(outputs, 1) == x - floor(x) on wrapped columns.
    o_mod = jnp.where(wrapped_col, o - flo, o)
    # Target wrapping when |o_mod - t| > 0.5 (wrapped columns only).
    wrap = wrapped_col & (jnp.abs(o_mod - t) > 0.5)
    t_mod = jnp.where(wrap, jnp.where(t < o_mod, t + 1.0, t - 1.0), t)
    diff = o_mod - t_mod

    # Fused per-element contribution: penalty/B + diff^2/(B*F).
    contrib = penalty * inv_b + (diff * diff) * inv_bf
    contrib = jnp.where(valid, contrib, 0.0)       # select, so garbage never leaks

    # (tile_r,128) -> (tile_r//8, 8, 128): layout-preserving split; the
    # leading-axis sum is pure vreg-wise VALU adds (no cross-lane XLU work).
    partial = jnp.sum(contrib.reshape(tile_r // 8, 8, _LANES), axis=0)

    @pl.when(i == 0)
    def _init():
        out_ref[...] = jnp.zeros_like(out_ref)

    out_ref[...] += partial


def _bcmse_loss_pallas(outputs, targets, *, tile_rows=4096,
                       num_cores=_NUM_CORES):
    """Tiled Pallas path. outputs/targets: [B, F] -> scalar f32 loss."""
    B, F = outputs.shape
    assert F >= 3 and _LANES % F == 0, "kernel assumes F>=3 and F | 128"
    total = B * F

    o = outputs.astype(jnp.float32).reshape(-1)
    t = targets.astype(jnp.float32).reshape(-1)

    # Free row-major reshape to [rows, 128] when total is 128-aligned
    # (B % 32 == 0). Otherwise pad the flat tail with zeros (exact: zero
    # penalty / zero squared error, and masked in-kernel anyway). Also keep
    # at least 8 rows so the block shape stays (8,128)-legal.
    total_pad = max(_round_up(total, _LANES), _LANES * 8)
    if total_pad != total:
        o = jnp.pad(o, (0, total_pad - total))
        t = jnp.pad(t, (0, total_pad - total))
    rows = total_pad // _LANES                     # >= 8

    o2 = o.reshape(rows, _LANES)
    t2 = t.reshape(rows, _LANES)

    # Tile rows: multiple of 8 and <= rows. Default (4096,128) f32 = 2 MiB per
    # input per buffer -> 8 MiB double-buffered for 2 inputs: fits v5e's
    # 16 MiB scoped default and v7x's 32 MiB scoped / 64 MiB physical VMEM.
    tile_r = max(8, min(_round_up(tile_rows, 8), (rows // 8) * 8))
    num_blocks = pl.cdiv(rows, tile_r)
    tiles_per_core = pl.cdiv(num_blocks, num_cores)

    def in_map(c, i):
        # Blocks are interleaved across cores. Clamp so overflow grid steps
        # re-read the last valid block (never a fully OOB DMA); the kernel
        # masks their contribution to exactly zero.
        return (jnp.minimum(i * num_cores + c, num_blocks - 1), 0)

    kernel = functools.partial(
        _bcmse_kernel,
        tile_r=tile_r,
        feats=F,
        total=total,
        inv_b=np.float32(1.0 / B),
        inv_bf=np.float32(1.0 / (B * F)),
        num_cores=num_cores,
    )

    partials = pl.pallas_call(
        kernel,
        out_shape=jax.ShapeDtypeStruct((num_cores * 8, _LANES), jnp.float32),
        grid=(num_cores, tiles_per_core),
        in_specs=[
            pl.BlockSpec((tile_r, _LANES), in_map),
            pl.BlockSpec((tile_r, _LANES), in_map),
        ],
        # Output block depends only on the parallel core axis -> resident
        # per-core accumulator across the inner ("arbitrary") reduction axis.
        out_specs=pl.BlockSpec((8, _LANES), lambda c, i: (c, 0)),
        compiler_params=pltpu.CompilerParams(
            dimension_semantics=("parallel", "arbitrary")),
    )(o2, t2)

    # Tiny (num_cores*8*128 element) final reduce, fused by XLA.
    return jnp.sum(partials)


def _bcmse_loss_xla(outputs, targets):
    """Fused-XLA path for small inputs (no custom-call launch overhead)."""
    o = outputs.astype(jnp.float32)
    t = targets.astype(jnp.float32)
    B, F = o.shape
    col = jnp.arange(F)[None, :]
    mask = (col == 1) | (col == 2)
    flo = jnp.floor(o)
    penalty = jnp.where(mask, jnp.abs(flo), 0.0)
    o_mod = jnp.where(mask, o - flo, o)
    wrap = mask & (jnp.abs(o_mod - t) > 0.5)
    t_mod = jnp.where(wrap, jnp.where(t < o_mod, t + 1.0, t - 1.0), t)
    diff = o_mod - t_mod
    return jnp.sum(penalty) / B + jnp.sum(diff * diff) / (B * F)


def bcmse_loss(outputs, targets, *, tile_rows=4096, force_pallas=False):
    """outputs, targets: [B, F] float32 -> scalar float32 loss."""
    B = outputs.shape[0]
    if not force_pallas and B < _PALLAS_MIN_BATCH:
        return _bcmse_loss_xla(outputs, targets)
    return _bcmse_loss_pallas(outputs, targets, tile_rows=tile_rows)


def _numpy_reference(outputs, targets):
    """Vectorized float64 reference with identical semantics."""
    o = np.array(outputs, dtype=np.float64)
    t = np.array(targets, dtype=np.float64)
    B, F = o.shape
    cols = np.arange(F)[None, :]
    mask = (cols == 1) | (cols == 2)
    flo = np.floor(o)
    penalty = np.where(mask, np.abs(flo), 0.0)
    o_mod = np.where(mask, o - flo, o)
    wrap = mask & (np.abs(o_mod - t) > 0.5)
    t_mod = np.where(wrap, np.where(t < o_mod, t + 1.0, t - 1.0), t)
    amount = penalty.sum() / B
    mse = np.mean((o_mod - t_mod) ** 2)
    return mse + amount
    # TODO(synk): PyTorch promotes the loss to float64; TPU Pallas keeps f32.


if __name__ == "__main__":
    key = jax.random.PRNGKey(0)
    k1, k2, k3, k4, k5, k6 = jax.random.split(key, 6)

    # --- Module's native shape (B=2, F=4): force the Pallas path. ---
    outputs_s = jax.random.uniform(k1, (BATCH_SIZE, FEATURES), jnp.float32,
                                   minval=-3.0, maxval=3.0)
    targets_s = jax.random.uniform(k2, (BATCH_SIZE, FEATURES), jnp.float32,
                                   minval=0.0, maxval=1.0)
    loss_s = bcmse_loss(outputs_s, targets_s, force_pallas=True)
    jax.block_until_ready(loss_s)
    ref_s = _numpy_reference(np.asarray(outputs_s), np.asarray(targets_s))
    assert np.allclose(np.asarray(loss_s), ref_s, rtol=1e-5, atol=1e-5), (loss_s, ref_s)

    # Fused-XLA fast path (default dispatch for small B) matches too.
    loss_x = bcmse_loss(outputs_s, targets_s)
    jax.block_until_ready(loss_x)
    assert np.allclose(np.asarray(loss_x), ref_s, rtol=1e-5, atol=1e-5), (loss_x, ref_s)

    # --- Aligned batch, small tiles: multi-tile accumulation on both core slots. ---
    B1 = 4096
    o1 = jax.random.uniform(k3, (B1, FEATURES), jnp.float32, minval=-3.0, maxval=3.0)
    t1 = jax.random.uniform(k4, (B1, FEATURES), jnp.float32, minval=0.0, maxval=1.0)
    l1 = bcmse_loss(o1, t1, force_pallas=True, tile_rows=32)
    jax.block_until_ready(l1)
    r1 = _numpy_reference(np.asarray(o1), np.asarray(t1))
    assert np.allclose(np.asarray(l1), r1, rtol=1e-4, atol=1e-4), (l1, r1)

    # --- Unaligned batch: flat zero-pad + in-kernel ragged-tail masking. ---
    B2 = 5000
    o2 = jax.random.uniform(k5, (B2, FEATURES), jnp.float32, minval=-3.0, maxval=3.0)
    t2 = jax.random.uniform(k6, (B2, FEATURES), jnp.float32, minval=0.0, maxval=1.0)
    l2 = bcmse_loss(o2, t2, force_pallas=True)
    jax.block_until_ready(l2)
    r2 = _numpy_reference(np.asarray(o2), np.asarray(t2))
    assert np.allclose(np.asarray(l2), r2, rtol=1e-4, atol=1e-4), (l2, r2)

    print("KERNEL_OK")
</pallas_src>

<mosaic_0001>
module attributes {stable_mosaic.version = 11 : i64} {
  func.func @_bcmse_kernel(%arg0: i32, %arg1: i32, %arg2: memref<8x128xf32, #tpu.memory_space<vmem>>, %arg3: memref<8x128xf32, #tpu.memory_space<vmem>>, %arg4: memref<8x128xf32, #tpu.memory_space<vmem>>) attributes {dimension_semantics = [#tpu.dimension_semantics<parallel>, #tpu.dimension_semantics<arbitrary>], iteration_bounds = array<i64: 2, 1>, scalar_prefetch = 0 : i64, scratch_operands = 0 : i64, tpu.core_type = #tpu.core_type<tc>, window_params = [{transform_indices = @transform_0, window_bounds = array<i64: 8, 128>}, {transform_indices = @transform_1, window_bounds = array<i64: 8, 128>}, {transform_indices = @transform_2, window_bounds = array<i64: 8, 128>}]} {
    %c0 = arith.constant 0 : index
    %c0_0 = arith.constant 0 : index
    %0 = vector.load %arg2[%c0, %c0_0] : memref<8x128xf32, #tpu.memory_space<vmem>>, vector<8x128xf32>
    %c0_1 = arith.constant 0 : index
    %c0_2 = arith.constant 0 : index
    %1 = vector.load %arg3[%c0_1, %c0_2] : memref<8x128xf32, #tpu.memory_space<vmem>>, vector<8x128xf32>
    %c2_i32 = arith.constant 2 : i32
    %2 = arith.muli %arg1, %c2_i32 : i32
    %3 = arith.addi %2, %arg0 : i32
    %4 = tpu.iota {dimensions = array<i32: 0>} : vector<8x128xi32>
    %5 = tpu.iota {dimensions = array<i32: 1>} : vector<8x128xi32>
    %c8_i32 = arith.constant 8 : i32
    %6 = arith.muli %3, %c8_i32 : i32
    %7 = vector.broadcast %6 : i32 to vector<8x128xi32>
    %8 = arith.addi %7, %4 : vector<8x128xi32>
    %c128_i32 = arith.constant 128 : i32
    %9 = vector.broadcast %c128_i32 : i32 to vector<8x128xi32>
    %10 = arith.muli %8, %9 : vector<8x128xi32>
    %11 = arith.addi %10, %5 : vector<8x128xi32>
    %c8_i32_3 = arith.constant 8 : i32
    %12 = vector.broadcast %c8_i32_3 : i32 to vector<8x128xi32>
    %13 = arith.cmpi slt, %11, %12 : vector<8x128xi32>
    %c4_i32 = arith.constant 4 : i32
    %c0_i32 = arith.constant 0 : i32
    %14 = arith.cmpi eq, %c4_i32, %c0_i32 : i32
    %c1_i32 = arith.constant 1 : i32
    %15 = arith.select %14, %c1_i32, %c4_i32 : i32
    %16 = vector.broadcast %15 : i32 to vector<8x128xi32>
    %17 = arith.remsi %5, %16 : vector<8x128xi32>
    %c0_i32_4 = arith.constant 0 : i32
    %18 = vector.broadcast %c0_i32_4 : i32 to vector<8x128xi32>
    %19 = arith.cmpi ne, %17, %18 : vector<8x128xi32>
    %c0_i32_5 = arith.constant 0 : i32
    %20 = vector.broadcast %c0_i32_5 : i32 to vector<8x128xi32>
    %21 = arith.cmpi slt, %17, %20 : vector<8x128xi32>
    %c0_i32_6 = arith.constant 0 : i32
    %22 = arith.cmpi slt, %15, %c0_i32_6 : i32
    %23 = vector.broadcast %22 : i1 to vector<8x128xi1>
    %24 = vector.broadcast %23 : vector<8x128xi1> to vector<8x128xi1>
    %25 = arith.xori %21, %24 : vector<8x128xi1>
    %26 = arith.andi %25, %19 : vector<8x128xi1>
    %27 = vector.broadcast %15 : i32 to vector<8x128xi32>
    %28 = arith.addi %17, %27 : vector<8x128xi32>
    %29 = arith.select %26, %28, %17 : vector<8x128xi1>, vector<8x128xi32>
    %c1_i32_7 = arith.constant 1 : i32
    %30 = vector.broadcast %c1_i32_7 : i32 to vector<8x128xi32>
    %31 = arith.cmpi eq, %29, %30 : vector<8x128xi32>
    %c2_i32_8 = arith.constant 2 : i32
    %32 = vector.broadcast %c2_i32_8 : i32 to vector<8x128xi32>
    %33 = arith.cmpi eq, %29, %32 : vector<8x128xi32>
    %34 = arith.ori %31, %33 : vector<8x128xi1>
    %35 = math.floor %0 : vector<8x128xf32>
    %36 = math.absf %35 : vector<8x128xf32>
    %cst = arith.constant 0.000000e+00 : f32
    %37 = vector.broadcast %cst : f32 to vector<8x128xf32>
    %38 = arith.select %34, %36, %37 : vector<8x128xi1>, vector<8x128xf32>
    %39 = arith.subf %0, %35 : vector<8x128xf32>
    %40 = arith.select %34, %39, %0 : vector<8x128xi1>, vector<8x128xf32>
    %41 = arith.subf %40, %1 : vector<8x128xf32>
    %42 = math.absf %41 : vector<8x128xf32>
    %cst_9 = arith.constant 5.000000e-01 : f32
    %43 = vector.broadcast %cst_9 : f32 to vector<8x128xf32>
    %44 = arith.cmpf ogt, %42, %43 : vector<8x128xf32>
    %45 = arith.andi %34, %44 : vector<8x128xi1>
    %46 = arith.cmpf olt, %1, %40 : vector<8x128xf32>
    %cst_10 = arith.constant 1.000000e+00 : f32
    %47 = vector.broadcast %cst_10 : f32 to vector<8x128xf32>
    %48 = arith.addf %1, %47 : vector<8x128xf32>
    %cst_11 = arith.constant 1.000000e+00 : f32
    %49 = vector.broadcast %cst_11 : f32 to vector<8x128xf32>
    %50 = arith.subf %1, %49 : vector<8x128xf32>
    %51 = arith.select %46, %48, %50 : vector<8x128xi1>, vector<8x128xf32>
    %52 = arith.select %45, %51, %1 : vector<8x128xi1>, vector<8x128xf32>
    %53 = arith.subf %40, %52 : vector<8x128xf32>
    %cst_12 = arith.constant 5.000000e-01 : f32
    %54 = vector.broadcast %cst_12 : f32 to vector<8x128xf32>
    %55 = arith.mulf %38, %54 : vector<8x128xf32>
    %56 = arith.mulf %53, %53 : vector<8x128xf32>
    %cst_13 = arith.constant 1.250000e-01 : f32
    %57 = vector.broadcast %cst_13 : f32 to vector<8x128xf32>
    %58 = arith.mulf %56, %57 : vector<8x128xf32>
    %59 = arith.addf %55, %58 : vector<8x128xf32>
    %cst_14 = arith.constant 0.000000e+00 : f32
    %60 = vector.broadcast %cst_14 : f32 to vector<8x128xf32>
    %61 = arith.select %13, %59, %60 : vector<8x128xi1>, vector<8x128xf32>
    %62 = vector.shape_cast %61 : vector<8x128xf32> to vector<1x8x128xf32>
    %cst_15 = arith.constant dense<0.000000e+00> : vector<8x128xf32>
    %63 = vector.multi_reduction <add>, %62, %cst_15 [0] : vector<1x8x128xf32> to vector<8x128xf32>
    %c0_i32_16 = arith.constant 0 : i32
    %64 = arith.cmpi eq, %arg1, %c0_i32_16 : i32
    %65 = arith.extui %64 : i1 to i32
    %c0_i32_17 = arith.constant 0 : i32
    %66 = arith.cmpi ne, %65, %c0_i32_17 : i32
    scf.if %66 {
      %cst_22 = arith.constant 0.000000e+00 : f32
      %70 = vector.broadcast %cst_22 : f32 to vector<8x128xf32>
      %c0_23 = arith.constant 0 : index
      %c0_24 = arith.constant 0 : index
      %71 = vector.load %arg4[%c0_23, %c0_24] : memref<8x128xf32, #tpu.memory_space<vmem>>, vector<8x128xf32>
      tpu.vector_store %arg4[%c0_23, %c0_24], %70 {strides = array<i32>} : memref<8x128xf32, #tpu.memory_space<vmem>>, vector<8x128xf32>,
    } else {
    }
    %c0_18 = arith.constant 0 : index
    %c0_19 = arith.constant 0 : index
    %67 = vector.load %arg4[%c0_18, %c0_19] : memref<8x128xf32, #tpu.memory_space<vmem>>, vector<8x128xf32>
    %68 = arith.addf %67, %63 : vector<8x128xf32>
    %c0_20 = arith.constant 0 : index
    %c0_21 = arith.constant 0 : index
    %69 = vector.load %arg4[%c0_20, %c0_21] : memref<8x128xf32, #tpu.memory_space<vmem>>, vector<8x128xf32>
    tpu.vector_store %arg4[%c0_20, %c0_21], %68 {strides = array<i32>} : memref<8x128xf32, #tpu.memory_space<vmem>>, vector<8x128xf32>,
    return
  }
  func.func @transform_0(%arg0: i32, %arg1: i32) -> (i32, i32) {
    %c2_i32 = arith.constant 2 : i32
    %0 = arith.muli %arg1, %c2_i32 : i32
    %1 = arith.addi %0, %arg0 : i32
    %c0_i32 = arith.constant 0 : i32
    %2 = arith.minsi %1, %c0_i32 : i32
    %c0_i32_0 = arith.constant 0 : i32
    %c0_i32_1 = arith.constant 0 : i32
    return %2, %c0_i32_0 : i32, i32
  }
  func.func @transform_1(%arg0: i32, %arg1: i32) -> (i32, i32) {
    %c2_i32 = arith.constant 2 : i32
    %0 = arith.muli %arg1, %c2_i32 : i32
    %1 = arith.addi %0, %arg0 : i32
    %c0_i32 = arith.constant 0 : i32
    %2 = arith.minsi %1, %c0_i32 : i32
    %c0_i32_0 = arith.constant 0 : i32
    %c0_i32_1 = arith.constant 0 : i32
    return %2, %c0_i32_0 : i32, i32
  }
  func.func @transform_2(%arg0: i32, %arg1: i32) -> (i32, i32) {
    %c0_i32 = arith.constant 0 : i32
    %c0_i32_0 = arith.constant 0 : i32
    return %arg0, %c0_i32 : i32, i32
  }
}

</mosaic_0001>

<bundles_post_ra>
// kernel: tpu_custom_call.1
= control target key start
LH: loop header
LB: loop body
LE: loop exit
PB: predicated region body
PF: predicated region fallthrough
CT: control target
= control target key end

     0   :  { %7 = vsyncpa [#allocation3], 0  ;;  %s893_s0 = inlined_call_operand.hbm [shape: f32[8,128], index: 0, kind: input, shape index: {}]   ;;  %s894_s1 = inlined_call_operand.hbm [shape: f32[8,128], index: 1, kind: input, shape index: {}]   ;;  %s895_s2 = inlined_call_operand.hbm [shape: f32[16,128], index: 2, kind: output, shape index: {}]  }
   0x1   :  { %9 = vsyncpa [#allocation3 + $0x1], 0 }
   0x2   :  { %10 = vsyncpa [#allocation6], 0 }
   0x3   :  { %12 = vsyncpa [#allocation6 + $0x1], 0 }
   0x4   :  { %13 = vsyncpa [#allocation4], 0 }
   0x5   :  { %15 = vsyncpa [#allocation4 + $0x1], 0  ;;  %s715_s9 = smov 0   ;;  %s717_s10 = smov 0  }
   0x6   :  { %s719_s11 = smov 0   ;;  %s721_s12 = smov 0  }
   0x7   :  { %s723_s13 = smov 0   ;;  %s725_s14 = smov 0  }
   0x8   :  { %s727_s15 = smov 0   ;;  %s729_s16 = smov 0  }
   0x9 LB: > { %s419_s17 = sadd.s32 4294967295, %s696_s16   ;;  %s420_s18 = sadd.s32 4294967294, %s696_s16   ;;  %s696_s16 = sphi %s729_s16, %s21_s16   ;;  %s692_s15 = sphi %s727_s15, %s909_s15   ;;  %s688_s14 = sphi %s725_s14, %s908_s14   ;;  %s684_s13 = sphi %s723_s13, %s883_s13   ;;  %s680_s12 = sphi %s721_s12, %s907_s12   ;;  %s676_s11 = sphi %s719_s11, %s906_s11   ;;  %s672_s10 = sphi %s717_s10, %s905_s10   ;;  %s668_s9 = sphi %s715_s9, %s904_s9  }
   0xa   : > { %s33_s19 = sadd.s32 1, %s692_s15  ;;  %p665_p1 = scmp.ne.s32.totalorder %s684_s13, 0 }
   0xb   : > { %p35_p0 = scmp.ge.s32.totalorder %s33_s19, 2  ;;  %p56_p2 = scmp.eq.s32.totalorder %s696_s16, 0 }
   0xc   : > { %p61_p3 = scmp.ne.s32.totalorder %s684_s13, %s680_s12  ;;  %p62_p5 = scmp.eq.s32.totalorder %s419_s17, 0 }
   0xd   : > { %s911_s19 = smov (%p35_p0, %s33_s19), 0  ;;  %p761_p4 = por %p665_p1, %p56_p2 }
   0xe   : > { %p765_p6 = por %p62_p5, %p61_p3  ;;  %s105_s22 = ssub.s32 %s692_s15, %s911_s19 }
   0xf   : > { %p106_p7 = scmp.eq.s32.totalorder %s105_s22, 0  ;;  %s108_s23 = sadd.s32 1, %s676_s11 }
  0x10   : > { %p118_p8 = scmp.ne.s32.totalorder %s676_s11, %s672_s10  ;;  %p119_p9 = scmp.eq.s32.totalorder %s419_s17, 1 }
  0x11   : > { %s773_s24 = scalar_select %p106_p7, %s676_s11, %s108_s23  }
  0x12   : > { %p124_p10 = scmp.ne.s32.totalorder %s672_s10, %s668_s9  ;;  %p125_p11 = scmp.eq.s32.totalorder %s420_s18, 1 }
  0x13   : > { %p779_p12 = por %p119_p9, %p118_p8  ;;  %p422_p13 = scmp.ge.s32.totalorder %s696_s16, 2 }
  0x14   : > { %p784_p0 = por %p125_p11, %p124_p10  ;;  %p454_p1 = scmp.lt.s32.totalorder %s696_s16, 2 }
  0x15   : > { %s159_s29 = sshll.u32 %s893_s0, 4  ;;  %s698_s30 = smov [#allocation2]   ;;  %s160_s29 = int_to_ptr.hbm [resolvable:$true] %s159_s29 }
  0x16   : > { %s161_s3 = sshll.u32 %s698_s30, 4  ;;  %p794_p2 = pnand %p454_p1, %p761_p4  ;;  %s162_s3 = int_to_ptr.vmem [resolvable:$true] %s161_s3 }
  0x17   : > { %p427_p3 = scmp.ge.s32.totalorder %s696_s16, 1  ;;  %p189_p5 = scmp.lt.s32.totalorder %s696_s16, 3 }
  0x18   : > { %s529_s5 = sshra.s32 %s160_s29, 4  ;;  %p533_p8 = pneg %p794_p2  ;;  %s530_s5 = int_to_ptr.hbm [resolvable:$true] %s529_s5 }
  0x19   : > { %s531_s6 = scalar_lea.hbm %s530_s5, 8  ;;  %s536_s12 = scalar_lea.hbm %s893_s0, 8 }
  0x1a   : > { %p532_p7 = scmp.ne.s32.totalorder %s530_s5, %s531_s6  ;;  %p538_p4 = scmp.lt.s32.totalorder %s536_s12, %s531_s6 }
  0x1c   : > { %p534_p9 = pnand %p533_p8, %p532_p7 }
  0x1e   : > { %p535_p10 = pneg %p534_p9 }
  0x20   : > { %p540_p11 = pnand %p538_p4, %p535_p10 }
  0x22   : > { %543 = shalt.err (!%p540_p11)
}
  0x23   : > { %446 = dma.hbm_to_vmem [thread:$0]  (!%p794_p2), %s160_s29, 128, %s162_s3, [#allocation3]  }
  0x24   : > { %p814_p1 = pnand %p427_p3, %p189_p5  ;;  %s182_s22 = sshll.u32 %s894_s1, 4  ;;  %s183_s22 = int_to_ptr.hbm [resolvable:$true] %s182_s22 }
  0x25   : > { %s699_s23 = smov [#allocation5]   ;;  %s559_s28 = sshra.s32 %s183_s22, 4  ;;  %s560_s28 = int_to_ptr.hbm [resolvable:$true] %s559_s28 }
  0x26   : > { %s184_s27 = sshll.u32 %s699_s23, 4  ;;  %s561_s30 = scalar_lea.hbm %s560_s28, 8  ;;  %s185_s27 = int_to_ptr.vmem [resolvable:$true] %s184_s27 }
  0x27   : > { %p562_p7 = scmp.ne.s32.totalorder %s560_s28, %s561_s30  ;;  %s566_s5 = scalar_lea.hbm %s894_s1, 8 }
  0x28   : > { %p568_p3 = scmp.lt.s32.totalorder %s566_s5, %s561_s30 }
  0x29   : > { %p564_p9 = pnand %p562_p7, %p533_p8 }
  0x2b   : > { %p565_p10 = pneg %p564_p9 }
  0x2d   : > { %p570_p5 = pnand %p568_p3, %p565_p10 }
  0x2f   : > { %573 = shalt.err (!%p570_p5)
}
  0x30   : > { %449 = dma.hbm_to_vmem [thread:$0]  (!%p794_p2), %s183_s22, 128, %s185_s27, [#allocation6]  }
  0x31   : > { %193 = sbr.rel (%p814_p1) target bundleno = 85 (0x55), region = 28  ;;  %s195_s6 = sand.u32 (!%p814_p1), 1, %s684_s13  }
  0x32   : > { %s428_s7 = sshll.u32 (!%p814_p1), %s195_s6, 3  ;;  %s196_s8 = scalar_lea.sflag (!%p814_p1), [#allocation3], %s195_s6 }
  0x33   : > { %s199_s12 = scalar_lea.vmem (!%p814_p1), [#allocation2], %s428_s7 }
  0x36   : > { %654 = dma.done.wait (%p765_p6), %s196_s8, 128  }
  0x37   : > { %656 = vsyncadd (%p765_p6), %s196_s8, 4294967168  ;;  %s206_s18 = scalar_lea.sflag [#allocation6], %s195_s6  ;;  %s209_s20 = scalar_lea.vmem [#allocation5], %s428_s7 }
  0x38   : > { %658 = dma.done.wait (%p765_p6), %s206_s18, 128  }
  0x39   : > { %660 = vsyncadd (%p765_p6), %s206_s18, 4294967168  ;;  %v248_v0 = vlaneseq  ;;  %v244_v3 = vld [vmem:[%s199_s12] sm:$0xff]  ;;  %s431_s4 = sshll.u32 %s688_s14, 3  ;;  %v245_v7 = vld [vmem:[%s209_s20] sm:$0xff]  ;;  %s233_s14 = sand.u32 1, %s672_s10  }
  0x3a   : > { %v273_v4 = vfloor.f32 %v244_v3  ;;  %v253_v8 = vstv %s431_s4  ;;  %v283_v11 = vadd.f32 1.0, %v245_v7  ;;  %v432_v12 = vadd.f32 -1.0, %v245_v7  ;;  %s430_s21 = sshll.u32 %s233_s14, 3  ;;  %s313_s23 = scalar_lea.hbm %s895_s2, %s431_s4 }
  0x3b   : > { %v251_v1 = vand.u32 127, %v248_v0  ;;  %v249_v5 = vshrl.u32 %v248_v0, 7  ;;  %s235_s27 = scalar_lea.vmem [#allocation7], %s430_s21  ;;  %s317_s30 = sshll.u32 %s313_s23, 4  ;;  %s318_s30 = int_to_ptr.hbm [resolvable:$true] %s317_s30 }
  0x3c   : > { %v276_v9 = vsub.f32 %v244_v3, %v273_v4  ;;  %v274_v15 = vand.u32 2147483647, %v273_v4  ;;  %s315_s28 = sshll.u32 %s235_s27, 4  ;;  %s303_s29 = scalar_lea.sflag [#allocation4], %s233_s14  ;;  %s316_s28 = int_to_ptr.vmem [resolvable:$true] %s315_s28 }
  0x3d   : > { %v262_v2 = vand.u32 3, %v251_v1  ;;  %v254_v13 = vadd.s32 %v253_v8, %v249_v5  ;;  %s603_s3 = sshra.s32 %s318_s30, 4  ;;  %s609_s8 = scalar_lea.hbm %s895_s2, 16  ;;  %s604_s3 = int_to_ptr.hbm [resolvable:$true] %s603_s3 }
  0x3e   : > { %s605_s5 = scalar_lea.hbm %s604_s3, 8  ;;  %p610_p4 = scmp.lt.s32.totalorder %s604_s3, %s895_s2 }
  0x3f   : > { %vm270_vm0 = vcmp.eq.s32.totalorder %v262_v2, 1  ;;  %vm271_vm1 = vcmp.eq.s32.totalorder %v262_v2, 2  ;;  %v255_v18 = vmul.u32 128, %v254_v13  ;;  %p606_p6 = scmp.ne.s32.totalorder %s604_s3, %s605_s5  ;;  %p611_p11 = scmp.lt.s32.totalorder %s609_s8, %s605_s5 }
  0x40   : > { %vm841_vm2 = vmor %vm270_vm0, %vm271_vm1 }
  0x41   : > { %v277_v10 = vsel %vm841_vm2, %v276_v9, %v244_v3  ;;  %v275_v19 = vsel %vm841_vm2, %v274_v15, 0.0  ;;  %v256_v22 = vadd.s32 %v255_v18, %v251_v1  ;;  %p607_p2 = pnand %p606_p6, %p779_p12  ;;  %p612_p1 = por %p611_p11, %p610_p4 }
  0x42   : > { %v278_v14 = vsub.f32 %v277_v10, %v245_v7  ;;  %vm282_vm3 = vcmp.lt.f32.partialorder %v245_v7, %v277_v10  ;;  %v288_v23 = vmul.f32 0.5, %v275_v19 }
  0x43   : > { %v285_v17 = vsel %vm282_vm3, %v283_v11, %v432_v12  ;;  %vm257_vm6 = vcmp.lt.s32.totalorder %v256_v22, 8  ;;  %p608_p8 = pneg %p607_p2 }
  0x44   : > { %v279_v16 = vand.u32 2147483647, %v278_v14 }
  0x45   : > { %p613_p7 = pnand %p612_p1, %p608_p8 }
  0x46   : > { %vm280_vm4 = vcmp.gt.f32.partialorder %v279_v16, 0.5 }
  0x47   : > { %vm281_vm5 = vmand %vm841_vm2, %vm280_vm4 }
  0x48   : > { %v286_v20 = vsel %vm281_vm5, %v285_v17, %v245_v7 }
  0x49   : > { %v287_v21 = vsub.f32 %v277_v10, %v286_v20 }
  0x4b   : > { %v289_v24 = vmul.f32 %v287_v21, %v287_v21 }
  0x4d   : > { %v290_v25 = vmul.f32 0.125, %v289_v24 }
  0x4f   : > { %v291_v26 = vadd.f32 %v290_v25, %v288_v23 }
  0x51   : > { %v292_v27 = vsel %vm257_vm6, %v291_v26, 0.0 }
  0x52   : > { %301 = vst [vmem:[%s235_s27] sm:$0xff] %v292_v27 }
  0x53   : > { %616 = shalt.err (!%p613_p7)
}
  0x54   : > { %441 = dma.vmem_to_hbm [thread:$0]  (%p779_p12), %s316_s28, 128, %s318_s30, %s303_s29  }
  0x55 PF: > { %s329_s20 = sand.u32 1, %s668_s9   ;;  %p451_p9 = pnand %p422_p13, %p784_p0 }
  0x56   : > { %s330_s4 = scalar_lea.sflag [#allocation4], %s329_s20 }
  0x57   : > { %p452_p10 = pneg %p451_p9 }
  0x59   : > { %662 = dma.done.wait (%p452_p10), %s330_s4, 128  }
  0x5a   : > { %664 = vsyncadd (%p452_p10), %s330_s4, 4294967168  ;;  %s21_s16 = sadd.s32 1, %s696_s16   ;;  %s904_s9 = smov %s672_s10 }
  0x5b   : > { %p18_p3 = scmp.ge.s32.totalorder %s21_s16, 4   ;;  %s905_s10 = smov %s676_s11 }
  0x5c   : > { %s906_s11 = smov %s773_s24  ;;  %s907_s12 = smov %s684_s13 }
  0x5d   : > { %s883_s13 = smov 0   ;;  %s908_s14 = smov %s692_s15 }
  0x5e   : > { %s909_s15 = smov %s911_s19  ;;  %20 = sbr.rel (!%p18_p3) target bundleno = 9 (0x9), region = 90 }
  0x63   :  { %336 = vsyncpa [#allocation3], 1 }
  0x64   :  { %338 = vsyncpa [#allocation3 + $0x1], 1 }
  0x65   :  { %339 = vsyncpa [#allocation6], 1 }
  0x66   :  { %341 = vsyncpa [#allocation6 + $0x1], 1 }
  0x67   :  { %342 = vsyncpa [#allocation4], 1 }
  0x68   :  { %344 = vsyncpa [#allocation4 + $0x1], 1 }

</bundles_post_ra>
